<compile_context>
chip_gen: v5e
topology: v5e:2x2
jax: 0.10.0
libtpu: 0.0.40
codegen_flags: <defaults>
</compile_context>

<pallas_src>
import jax
import jax.numpy as jnp
from jax import lax
from jax.experimental import pallas as pl
from jax.experimental.pallas import tpu as pltpu

EPS = 1e-12
_LANE = 128

# Per-grid-step VMEM working-set target: 2x double-buffered (in + out)
# pipeline buffers plus ~3 block-sized f32 temporaries inside the kernel.
_VMEM_TARGET_BYTES = 36 * 1024 * 1024
# Fallback request cap when the hardware query is unavailable (safe on v7x's
# 64 MiB physical VMEM per TensorCore, leaves compiler-scratch headroom).
_VMEM_CAP_FALLBACK = 48 * 1024 * 1024


def _round_up(x: int, m: int) -> int:
    return (x + m - 1) // m * m


def _vmem_request_cap() -> int:
    """~75% of physical VMEM; never ask for all of it (compiler scratch)."""
    try:
        return int(pltpu.get_tpu_info().vmem_capacity_bytes * 3 // 4)
    except Exception:
        return _VMEM_CAP_FALLBACK


def _normalize_kernel(x_ref, o_ref):
    # Block: (TB, C, TR, 128). Reduce over the channel axis (torch dim=1).
    x = x_ref[...].astype(jnp.float32)
    sumsq = jnp.sum(x * x, axis=1, keepdims=True)          # (TB, 1, TR, 128)
    # x / max(||x||_2, eps) == x * rsqrt(max(sum(x^2), eps^2)); eps^2 = 1e-24
    # is a normal f32 and rsqrt runs on the EUP (its own VLIW slot).
    inv = lax.rsqrt(jnp.maximum(sumsq, EPS * EPS))
    o_ref[...] = (x * inv).astype(o_ref.dtype)


def _choose_tiles(B: int, C: int, rows: int, itemsize: int, vmem_target: int):
    """Pick (tb, tr): batch items and 128-lane spatial rows per block."""
    # VMEM bytes one block element costs: 2x double-buffered in + out pipeline
    # buffers (4 * itemsize) + ~3 block-sized f32 temporaries in the kernel.
    per_elem_vmem = 4 * itemsize + 3 * 4
    max_elems = max(1, vmem_target // per_elem_vmem)

    row_mult = 8 * (4 // max(1, itemsize))     # 8 f32 / 16 bf16 / 32 int8
    elems_per_row = C * _LANE

    # 1) Grow spatial rows per block first.
    max_rows = max(1, max_elems // elems_per_row)
    if rows <= max_rows:
        tr = rows                               # full spatial extent: always legal
    else:
        tr = max(row_mult, (max_rows // row_mult) * row_mult)

    # 2) If a whole image plane fits with room to spare, batch images per block
    #    (reduction is over axis 1, so multi-batch blocks stay correct).
    tb = 1
    if tr == rows:
        tb = max(1, min(B, max_elems // (elems_per_row * rows)))

    # 3) Keep >= 2 grid steps when possible so v7x's two TensorCores both work.
    if pl.cdiv(B, tb) * pl.cdiv(rows, tr) < 2:
        if B >= 2:
            tb = (B + 1) // 2
        elif rows >= 2 * row_mult:
            tr = _round_up((rows + 1) // 2, row_mult)

    return tb, tr


def normalize(x: jax.Array) -> jax.Array:
    """F.normalize(x, p=2, dim=1, eps=1e-12) for NCHW input [B, C, H, W]."""
    B, C, H, W = x.shape
    S = H * W
    itemsize = jnp.dtype(x.dtype).itemsize

    # Pad spatial only to the next multiple of 128 lanes (zero-filled) so the
    # [B, C, rows, 128] reshape is valid and in-bounds lanes never see garbage.
    # Row/batch raggedness vs. the block tile is left to the grid: Pallas masks
    # out-of-range stores, and garbage rsqrt values only land in dropped rows.
    s_pad = _round_up(S, _LANE)
    rows = s_pad // _LANE

    x3 = x.reshape(B, C, S)
    if s_pad != S:
        x3 = jnp.pad(x3, ((0, 0), (0, 0), (0, s_pad - S)))
    x4 = x3.reshape(B, C, rows, _LANE)

    vmem_cap = _vmem_request_cap()
    vmem_target = min(vmem_cap - (8 << 20), _VMEM_TARGET_BYTES)
    tb, tr = _choose_tiles(B, C, rows, itemsize, vmem_target)

    grid = (pl.cdiv(B, tb), pl.cdiv(rows, tr))
    block = (tb, C, tr, _LANE)
    index_map = lambda b, s: (b, 0, s, 0)

    block_elems = tb * C * tr * _LANE
    block_bytes = block_elems * itemsize
    # 2x double-buffered in + out pipeline buffers + ~3 f32 temporaries.
    est = 4 * block_bytes + 3 * block_elems * 4
    # Always set the limit from the estimate: v5e's default scoped limit is
    # only 16 MiB; cap well below physical VMEM (v7x: 64 MiB/TC).
    vmem_limit = int(min(max(est + (8 << 20), 16 << 20), vmem_cap))
    # TODO(synk): for very large C where even an 8-row tile overflows the v7x
    # VMEM cap, fall back to a two-pass C-split (accumulate sumsq, then scale).

    in_spec_kwargs = {}
    if block_bytes < (2 << 20) and grid[0] * grid[1] >= 4:
        # Tiny back-to-back blocks expose DMA latency; add a third buffer.
        in_spec_kwargs["pipeline_mode"] = pl.Buffered(3)

    cost = pl.CostEstimate(
        flops=3 * B * C * s_pad,                      # square + add + scale
        transcendentals=B * s_pad,                    # one rsqrt per position
        bytes_accessed=2 * B * C * s_pad * itemsize,  # read + write
    )

    out4 = pl.pallas_call(
        _normalize_kernel,
        out_shape=jax.ShapeDtypeStruct((B, C, rows, _LANE), x.dtype),
        grid_spec=pl.GridSpec(
            grid=grid,
            in_specs=[pl.BlockSpec(block, index_map, **in_spec_kwargs)],
            out_specs=pl.BlockSpec(block, index_map),
        ),
        compiler_params=pltpu.CompilerParams(
            dimension_semantics=("parallel", "parallel"),
            vmem_limit_bytes=vmem_limit,
        ),
        cost_estimate=cost,
    )(x4)

    out3 = out4.reshape(B, C, s_pad)
    if s_pad != S:
        out3 = out3[:, :, :S]
    return out3.reshape(B, C, H, W)


def _reference(x: jax.Array) -> jax.Array:
    xf = x.astype(jnp.float32)
    norm = jnp.sqrt(jnp.sum(xf * xf, axis=1, keepdims=True))
    return (xf / jnp.maximum(norm, EPS)).astype(x.dtype)


if __name__ == "__main__":
    key = jax.random.PRNGKey(0)

    # Main check: B=2, C=4, 16x16 (exercises multi-batch blocking + 2-step grid).
    x = jax.random.normal(key, (2, 4, 16, 16), dtype=jnp.float32)
    out = normalize(x)
    jax.block_until_ready(out)
    ref = _reference(x)
    assert out.shape == x.shape and out.dtype == x.dtype
    assert jnp.allclose(out, ref, atol=1e-5, rtol=1e-5), (
        float(jnp.max(jnp.abs(out - ref)))
    )

    # Ragged-lane check: S % 128 != 0 exercises the minimal zero-pad path.
    x2 = jax.random.normal(jax.random.PRNGKey(0), (1, 3, 9, 9), dtype=jnp.float32)
    out2 = normalize(x2)
    jax.block_until_ready(out2)
    ref2 = _reference(x2)
    assert out2.shape == x2.shape and out2.dtype == x2.dtype
    assert jnp.allclose(out2, ref2, atol=1e-5, rtol=1e-5), (
        float(jnp.max(jnp.abs(out2 - ref2)))
    )

    print("KERNEL_OK")
</pallas_src>

<mosaic_0001>
module attributes {stable_mosaic.version = 11 : i64} {
  func.func @_normalize_kernel(%arg0: i32, %arg1: i32, %arg2: memref<1x4x2x128xf32, #tpu.memory_space<vmem>>, %arg3: memref<1x4x2x128xf32, #tpu.memory_space<vmem>>) attributes {dimension_semantics = [#tpu.dimension_semantics<parallel>, #tpu.dimension_semantics<parallel>], iteration_bounds = array<i64: 2, 1>, scalar_prefetch = 0 : i64, scratch_operands = 0 : i64, tpu.core_type = #tpu.core_type<tc>, window_params = [{transform_indices = @transform_0, window_bounds = array<i64: 1, 4, 2, 128>}, {transform_indices = @transform_1, window_bounds = array<i64: 1, 4, 2, 128>}]} {
    %c0 = arith.constant 0 : index
    %c0_0 = arith.constant 0 : index
    %c0_1 = arith.constant 0 : index
    %c0_2 = arith.constant 0 : index
    %0 = vector.load %arg2[%c0, %c0_0, %c0_1, %c0_2] : memref<1x4x2x128xf32, #tpu.memory_space<vmem>>, vector<1x4x2x128xf32>
    %1 = arith.mulf %0, %0 : vector<1x4x2x128xf32>
    %cst = arith.constant dense<0.000000e+00> : vector<1x2x128xf32>
    %2 = vector.multi_reduction <add>, %1, %cst [1] : vector<1x4x2x128xf32> to vector<1x2x128xf32>
    %3 = vector.shape_cast %2 : vector<1x2x128xf32> to vector<1x1x2x128xf32>
    %cst_3 = arith.constant 1.000000e-24 : f32
    %4 = vector.broadcast %cst_3 : f32 to vector<1x1x2x128xf32>
    %5 = arith.maximumf %3, %4 : vector<1x1x2x128xf32>
    %6 = math.rsqrt %5 : vector<1x1x2x128xf32>
    %7 = vector.broadcast %6 : vector<1x1x2x128xf32> to vector<1x4x2x128xf32>
    %8 = arith.mulf %0, %7 : vector<1x4x2x128xf32>
    %c0_4 = arith.constant 0 : index
    %c0_5 = arith.constant 0 : index
    %c0_6 = arith.constant 0 : index
    %c0_7 = arith.constant 0 : index
    %9 = vector.load %arg3[%c0_4, %c0_5, %c0_6, %c0_7] : memref<1x4x2x128xf32, #tpu.memory_space<vmem>>, vector<1x4x2x128xf32>
    tpu.vector_store %arg3[%c0_4, %c0_5, %c0_6, %c0_7], %8 {strides = array<i32>} : memref<1x4x2x128xf32, #tpu.memory_space<vmem>>, vector<1x4x2x128xf32>,
    return
  }
  func.func @transform_0(%arg0: i32, %arg1: i32) -> (i32, i32, i32, i32) {
    %c0_i32 = arith.constant 0 : i32
    %c0_i32_0 = arith.constant 0 : i32
    %c0_i32_1 = arith.constant 0 : i32
    return %arg0, %c0_i32, %arg1, %c0_i32_0 : i32, i32, i32, i32
  }
  func.func @transform_1(%arg0: i32, %arg1: i32) -> (i32, i32, i32, i32) {
    %c0_i32 = arith.constant 0 : i32
    %c0_i32_0 = arith.constant 0 : i32
    %c0_i32_1 = arith.constant 0 : i32
    return %arg0, %c0_i32, %arg1, %c0_i32_0 : i32, i32, i32, i32
  }
}

</mosaic_0001>

<bundles_post_ra>
// kernel: tpu_custom_call.1
= control target key start
LH: loop header
LB: loop body
LE: loop exit
PB: predicated region body
PF: predicated region fallthrough
CT: control target
= control target key end

     0   :  { %6 = vsyncpa [#allocation3], 0  ;;  %s628_s0 = inlined_call_operand.hbm [shape: f32[2,4,2,128], index: 0, kind: input, shape index: {}]   ;;  %s629_s1 = inlined_call_operand.hbm [shape: f32[2,4,2,128], index: 1, kind: output, shape index: {}]  }
   0x1   :  { %8 = vsyncpa [#allocation3 + $0x1], 0 }
   0x2   :  { %9 = vsyncpa [#allocation4], 0 }
   0x3   :  { %11 = vsyncpa [#allocation4 + $0x1], 0  ;;  %s504_s6 = smov 0   ;;  %s506_s7 = smov 0  }
   0x4   :  { %s508_s8 = smov 0   ;;  %s510_s9 = smov 0  }
   0x5   :  { %s512_s10 = smov 0   ;;  %s514_s11 = smov 0  }
   0x6 LB: > { %s291_s12 = sadd.s32 4294967295, %s488_s11   ;;  %s292_s13 = sadd.s32 4294967294, %s488_s11   ;;  %s488_s11 = sphi %s514_s11, %s17_s11   ;;  %s484_s10 = sphi %s512_s10, %s638_s10   ;;  %s480_s9 = sphi %s510_s9, %s637_s9   ;;  %s476_s8 = sphi %s508_s8, %s636_s8   ;;  %s472_s7 = sphi %s506_s7, %s635_s7   ;;  %s468_s6 = sphi %s504_s6, %s634_s6  }
   0x7   : > { %s29_s14 = sadd.s32 1, %s484_s10  ;;  %s38_s15 = sadd.s32 1, %s476_s8 }
   0x8   : > { %p31_p0 = scmp.ge.s32.totalorder %s29_s14, 2  ;;  %p45_p1 = scmp.ne.s32.totalorder %s476_s8, %s472_s7 }
   0x9   : > { %p46_p2 = scmp.eq.s32.totalorder %s488_s11, 0  ;;  %p51_p3 = scmp.ne.s32.totalorder %s472_s7, %s468_s6 }
   0xa   : > { %s640_s14 = smov (%p31_p0, %s29_s14), 0  ;;  %p52_p5 = scmp.eq.s32.totalorder %s291_s12, 0 }
   0xb   : > { %p545_p4 = por %p46_p2, %p45_p1  ;;  %s33_s17 = ssub.s32 %s484_s10, %s640_s14 }
   0xc   : > { %p77_p6 = scmp.eq.s32.totalorder %s291_s12, 1  ;;  %p36_p7 = scmp.eq.s32.totalorder %s33_s17, 0 }
   0xd   : > { %p551_p8 = por %p52_p5, %p51_p3  ;;  %p83_p10 = scmp.eq.s32.totalorder %s292_s13, 1 }
   0xe   : > { %p555_p9 = por %p77_p6, %p45_p1  ;;  %p294_p12 = scmp.ge.s32.totalorder %s488_s11, 2 }
   0xf   : > { %s560_s20 = scalar_select %p36_p7, %s476_s8, %s38_s15  }
  0x10   : > { %p562_p11 = por %p83_p10, %p51_p3  ;;  %p320_p13 = scmp.lt.s32.totalorder %s488_s11, 2 }
  0x11   : > { %s103_s22 = sand.u32 1, %s476_s8   ;;  %s306_s24 = sshll.u32 %s484_s10, 3 }
  0x12   : > { %s295_s23 = sshll.u32 %s103_s22, 3  ;;  %s113_s27 = scalar_lea.hbm %s628_s0, %s306_s24 }
  0x13   : > { %s107_s28 = scalar_lea.vmem [#allocation2], %s295_s23  ;;  %s114_s30 = sshll.u32 %s113_s27, 4  ;;  %s115_s30 = int_to_ptr.hbm [resolvable:$true] %s114_s30 }
  0x14   : > { %s116_s29 = sshll.u32 %s107_s28, 4  ;;  %p313_p0 = pnand %p320_p13, %p545_p4  ;;  %s117_s29 = int_to_ptr.vmem [resolvable:$true] %s116_s29 }
  0x15   : > { %p298_p1 = scmp.ge.s32.totalorder %s488_s11, 1  ;;  %s104_s2 = scalar_lea.sflag [#allocation3], %s103_s22 }
  0x16   : > { %s490_s3 = smov 32   ;;  %s491_s4 = smov 2  }
  0x17   : > { %315 = dma.hbm_to_vmem [thread:$0]  (!%p313_p0), %s115_s30, 128, %s117_s29, %s104_s2, %s490_s3, %s490_s3, %s491_s4  }
  0x18   : > { %p124_p2 = scmp.lt.s32.totalorder %s488_s11, 3 }
  0x1a   : > { %p125_p3 = pnand %p298_p1, %p124_p2 }
  0x1b   : > { %s578_s5 = sand.u32 (!%p125_p3), 1, %s472_s7  }
  0x1c   : > { %128 = sbr.rel (%p125_p3) target bundleno = 73 (0x49), region = 24  ;;  %s299_s12 = sshll.u32 (!%p125_p3), %s578_s5, 3 }
  0x1d   : > { %s131_s13 = scalar_lea.sflag (!%p125_p3), [#allocation3], %s578_s5  ;;  %s134_s15 = scalar_lea.vmem (!%p125_p3), [#allocation2], %s299_s12 }
  0x21   : > { %459 = dma.done.wait (%p551_p8), %s131_s13, 128  }
  0x22   : > { %461 = vsyncadd (%p551_p8), %s131_s13, 4294967168  ;;  %vm162_vm0 = vcmask 1041408   ;;  %v154_v0 = vld [vmem:[%s134_s15] sm:$0x3]  ;;  %v155_v1 = vld [vmem:[%s134_s15 + $0x2] sm:$0x3] }
  0x23   : > { %v156_v2 = vld [vmem:[%s134_s15 + $0x4] sm:$0x3]  ;;  %v157_v3 = vld [vmem:[%s134_s15 + $0x6] sm:$0x3]  ;;  %v158_v4 = vmul.f32 %v154_v0, %v154_v0  ;;  %v159_v5 = vmul.f32 %v155_v1, %v155_v1  ;;  %s307_s16 = sshll.u32 %s480_s9, 3  ;;  %s153_s23 = scalar_lea.vmem [#allocation5], %s299_s12 }
  0x24   : > { %v160_v6 = vmul.f32 %v156_v2, %v156_v2  ;;  %v161_v7 = vmul.f32 %v157_v3, %v157_v3  ;;  %s202_s22 = scalar_lea.hbm %s629_s1, %s307_s16  ;;  %s203_s24 = sshll.u32 %s153_s23, 4  ;;  %s204_s24 = int_to_ptr.vmem [resolvable:$true] %s203_s24 }
  0x25   : > { %v163_v8 = vsel %vm162_vm0, %v158_v4, 0.0  ;;  %v164_v9 = vsel %vm162_vm0, %v159_v5, 0.0  ;;  %s205_s25 = sshll.u32 %s202_s22, 4  ;;  %s190_s9 = scalar_lea.sflag [#allocation4], %s578_s5  ;;  %s206_s25 = int_to_ptr.hbm [resolvable:$true] %s205_s25 }
  0x26   : > { %v166_v10 = vsel %vm162_vm0, %v160_v6, 0.0  ;;  %v165_v11 = vadd.f32 %v164_v9, %v163_v8  ;;  %v168_v12 = vsel %vm162_vm0, %v161_v7, 0.0  ;;  %s420_s26 = sshra.s32 %s206_s25, 4  ;;  %s426_s30 = scalar_lea.hbm %s629_s1, 16  ;;  %s421_s26 = int_to_ptr.hbm [resolvable:$true] %s420_s26 }
  0x27   : > { %s422_s27 = scalar_lea.hbm %s421_s26, 8  ;;  %p427_p7 = scmp.lt.s32.totalorder %s421_s26, %s629_s1 }
  0x28   : > { %v167_v13 = vadd.f32 %v166_v10, %v165_v11  ;;  %p423_p4 = scmp.ne.s32.totalorder %s421_s26, %s422_s27  ;;  %p428_p8 = scmp.lt.s32.totalorder %s426_s30, %s422_s27 }
  0x2a   : > { %v169_v14 = vadd.f32 %v168_v12, %v167_v13  ;;  %p424_p5 = pnand %p423_p4, %p555_p9  ;;  %p429_p10 = por %p428_p8, %p427_p7 }
  0x2c   : > { %v170_v15 = vmax.f32 %v169_v14, 1e-24  ;;  %p425_p6 = pneg %p424_p5 }
  0x2e   : > { %374 = vrsqrt.f32 %v170_v15  ;;  %vm177_vm1 = vweird.f32 %v170_v15  ;;  %p430_p13 = pnand %p429_p10, %p425_p6 }
  0x34   : > { %v375_v16 = vpop.eup %374 }
  0x35   : > { %v172_v17 = vmul.f32 %v375_v16, %v170_v15  ;;  %vm178_vm2 = vweird.f32 %v375_v16 }
  0x36   : > { %vm179_vm3 = vmor %vm177_vm1, %vm178_vm2 }
  0x37   : > { %v173_v18 = vmul.f32 %v375_v16, %v172_v17 }
  0x39   : > { %v174_v19 = vmul.f32 0.5, %v173_v18 }
  0x3b   : > { %v175_v20 = vsub.f32 1.5, %v174_v19 }
  0x3d   : > { %v176_v21 = vmul.f32 %v375_v16, %v175_v20 }
  0x3f   : > { %v180_v22 = vsel %vm179_vm3, %v375_v16, %v176_v21 }
  0x40   : > { %v181_v23 = vmul.f32 %v180_v22, %v154_v0  ;;  %v182_v24 = vmul.f32 %v180_v22, %v155_v1  ;;  %v183_v25 = vmul.f32 %v180_v22, %v156_v2  ;;  %v184_v26 = vmul.f32 %v180_v22, %v157_v3 }
  0x42   : > { %185 = vst [vmem:[%s153_s23] sm:$0x3] %v181_v23 }
  0x43   : > { %186 = vst [vmem:[%s153_s23 + $0x2] sm:$0x3] %v182_v24 }
  0x44   : > { %187 = vst [vmem:[%s153_s23 + $0x4] sm:$0x3] %v183_v25 }
  0x45   : > { %188 = vst [vmem:[%s153_s23 + $0x6] sm:$0x3] %v184_v26 }
  0x46   : > { %433 = shalt.err (!%p430_p13)
}
  0x47   : > { %s492_s4 = smov 32   ;;  %s493_s5 = smov 2  }
  0x48   : > { %310 = dma.vmem_to_hbm [thread:$0]  (%p555_p9), %s204_s24, 128, %s206_s25, %s190_s9, %s492_s4, %s492_s4, %s493_s5  }
  0x49 PF: > { %s220_s12 = sand.u32 1, %s468_s6   ;;  %p317_p0 = pnand %p294_p12, %p562_p11 }
  0x4a   : > { %s221_s13 = scalar_lea.sflag [#allocation4], %s220_s12 }
  0x4b   : > { %p318_p1 = pneg %p317_p0 }
  0x4d   : > { %463 = dma.done.wait (%p318_p1), %s221_s13, 128  }
  0x4e   : > { %465 = vsyncadd (%p318_p1), %s221_s13, 4294967168  ;;  %s17_s11 = sadd.s32 1, %s488_s11   ;;  %s634_s6 = smov %s472_s7 }
  0x4f   : > { %p14_p2 = scmp.ge.s32.totalorder %s17_s11, 4   ;;  %s635_s7 = smov %s476_s8 }
  0x50   : > { %s636_s8 = smov %s560_s20  ;;  %s637_s9 = smov %s484_s10 }
  0x51   : > { %s638_s10 = smov %s640_s14  ;;  %16 = sbr.rel (!%p14_p2) target bundleno = 6 (0x6), region = 69 }
  0x56   :  { %227 = vsyncpa [#allocation3], 1 }
  0x57   :  { %229 = vsyncpa [#allocation3 + $0x1], 1 }
  0x58   :  { %230 = vsyncpa [#allocation4], 1 }
  0x59   :  { %232 = vsyncpa [#allocation4 + $0x1], 1 }

</bundles_post_ra>
